<compile_context>
chip_gen: v5e
topology: v5e:2x2
jax: 0.10.0
libtpu: 0.0.40
codegen_flags: <defaults>
</compile_context>

<pallas_src>
import functools

import jax
import jax.numpy as jnp
from jax.experimental import pallas as pl
from jax.experimental.pallas import tpu as pltpu

_TM_TARGET = 512        # mem-bound: big M tiles amortize the ~0.35us/step overhead
_MIN_GRID_STEPS = 8     # >= 4 steps per v7x TensorCore after megacore sharding
_MIN_PALLAS_M = 512     # below this, launch/DMA-setup overhead dominates -> XLA dot
_MIN_PALLAS_K = 128     # K < 128 uses a fraction of the MXU contraction width -> XLA dot


def _round_up(x, m):
    return ((x + m - 1) // m) * m


def _patch_embed_kernel(p_ref, w_ref, b_ref, o_ref):
    # bf16 x bf16 -> f32 accumulate on the MXU; bias add in f32 on the VPU
    # (v5e has no bf16 VPU path), then cast to the requested output dtype.
    acc = jnp.dot(p_ref[...], w_ref[...], preferred_element_type=jnp.float32)
    o_ref[...] = (acc + b_ref[...]).astype(o_ref.dtype)


@functools.partial(jax.jit, static_argnames=("patch_size", "compute_dtype", "out_dtype"))
def patch_embedding_forward(x, weight, bias, *, patch_size,
                            compute_dtype=jnp.bfloat16, out_dtype=jnp.float32):
    """Pallas implementation of PatchEmbedding.forward.

    x:      (B, C, H, W)        float32
    weight: (E, C, P, P)        float32  (PyTorch Conv2d weight layout)
    bias:   (E,)                float32
    returns (B, num_patches, E) out_dtype
    """
    B, C, H, W = x.shape
    P = patch_size
    if H % P != 0 or W % P != 0:
        raise ValueError(f"img size {(H, W)} must be divisible by patch_size={P}")
    Hp, Wp = H // P, W // P
    num_patches = Hp * Wp
    E = weight.shape[0]
    K = C * P * P
    M, N = B * num_patches, E

    # --- patch extraction: non-overlapping conv == GEMM over patch rows -------
    # (B,C,Hp,P,Wp,P) -> (B,Hp,Wp,C,P,P) -> (M, K).  K flatten order (C,Ph,Pw)
    # matches Conv2d's weight flattening so the weight is just reshape+transpose.
    # TODO(synk): verify on HLO/xprof that this transpose+cast actually fuses into
    # the kernel's input DMA (allow_input_fusion); if not, accept NHWC inputs or
    # gather patches in-kernel (memory_space=pl.ANY + manual DMA) to avoid an
    # extra HBM pass over the activations.
    patches = x.reshape(B, C, Hp, P, Wp, P).transpose(0, 2, 4, 1, 3, 5).reshape(M, K)
    w_mat = weight.reshape(E, K).T                       # (K, E)
    b_mat = bias.reshape(1, E).astype(jnp.float32)

    if M < _MIN_PALLAS_M or K < _MIN_PALLAS_K:
        # MXU-starved / launch-overhead regime: plain f32 dot via XLA.
        out = jnp.dot(patches.astype(jnp.float32), w_mat.astype(jnp.float32)) + b_mat
        return out.reshape(B, num_patches, E).astype(out_dtype)

    patches = patches.astype(compute_dtype)
    w_mat = w_mat.astype(compute_dtype)
    in_bytes = jnp.dtype(compute_dtype).itemsize
    out_bytes = jnp.dtype(out_dtype).itemsize

    # Whole embed_dim as one lane-dense N block (constant block index) so the
    # weight and bias are DMA'd into VMEM exactly once and stay resident.
    Np = _round_up(N, 128)
    if Np != N:
        w_mat = jnp.pad(w_mat, ((0, 0), (0, Np - N)))
        b_mat = jnp.pad(b_mat, ((0, 0), (0, Np - N)))

    # M tile: as large as possible (mem-bound), but keep >= _MIN_GRID_STEPS grid
    # steps so DMA/compute overlap survives megacore sharding on v7x.
    TM = _TM_TARGET
    if pl.cdiv(M, TM) < _MIN_GRID_STEPS:
        TM = max(128, _round_up(pl.cdiv(M, _MIN_GRID_STEPS), 128))
    TM = min(TM, _round_up(M, 8))
    grid = (pl.cdiv(M, TM),)      # no activation pad, no output slice: edge block
                                  # gets bounded DMA + masked stores.

    # Generation-aware VMEM budget (v7x: 64 MiB/TC; v5e/v6e: 128 MiB).
    try:
        vmem_cap = int(pltpu.get_tpu_info().vmem_capacity_bytes)
    except Exception:  # pragma: no cover - conservative default
        vmem_cap = 64 * 1024 * 1024
    vmem_need = (2 * TM * K * in_bytes        # double-buffered activation tiles
                 + 2 * K * Np * in_bytes      # resident weight (buffers still allocated x2)
                 + 2 * Np * 4                 # resident bias
                 + 2 * TM * Np * out_bytes)   # double-buffered output tiles
    vmem_ceiling = max(int(0.7 * vmem_cap), 32 * 1024 * 1024)
    vmem_limit = int(min(max(2 * vmem_need, 16 * 1024 * 1024), vmem_ceiling))

    out = pl.pallas_call(
        _patch_embed_kernel,
        out_shape=jax.ShapeDtypeStruct((M, Np), out_dtype),
        grid=grid,
        in_specs=[
            pl.BlockSpec((TM, K), lambda i: (i, 0)),    # activations: tile M, full K
            pl.BlockSpec((K, Np), lambda i: (0, 0)),    # weight: VMEM-resident, one DMA
            pl.BlockSpec((1, Np), lambda i: (0, 0)),    # bias: VMEM-resident
        ],
        out_specs=pl.BlockSpec((TM, Np), lambda i: (i, 0)),
        compiler_params=pltpu.CompilerParams(
            dimension_semantics=("parallel",),
            vmem_limit_bytes=vmem_limit,
            allow_input_fusion=[True, False, False],
        ),
        cost_estimate=pl.CostEstimate(
            flops=2 * M * K * Np,
            transcendentals=0,
            bytes_accessed=(M * K + K * Np) * in_bytes + Np * 4 + M * Np * out_bytes,
        ),
    )(patches, w_mat, b_mat)

    if Np != N:
        out = out[:, :N]
    return out.reshape(B, num_patches, E)


if __name__ == "__main__":
    # Config that exercises the Pallas path while staying small: K = C*P*P = 128
    # (full MXU contraction width), M = B*num_patches = 1024 patch rows -> an
    # 8-step "parallel" grid with the whole weight VMEM-resident.
    img_size, patch_size, in_channels, embed_dim = 16, 4, 8, 128
    batch = 64

    key = jax.random.PRNGKey(0)
    kx, kw, kb = jax.random.split(key, 3)
    x = jax.random.normal(kx, (batch, in_channels, img_size, img_size), jnp.float32)
    weight = 0.02 * jax.random.normal(
        kw, (embed_dim, in_channels, patch_size, patch_size), jnp.float32)
    bias = 0.02 * jax.random.normal(kb, (embed_dim,), jnp.float32)

    out = patch_embedding_forward(x, weight, bias, patch_size=patch_size)
    out = jax.block_until_ready(out)

    num_patches = (img_size // patch_size) ** 2
    assert out.shape == (batch, num_patches, embed_dim), out.shape

    # Reference: Conv2d(kernel=stride=P) + flatten(2) + transpose(1, 2).
    ref = jax.lax.conv_general_dilated(
        x, weight, window_strides=(patch_size, patch_size), padding="VALID",
        dimension_numbers=("NCHW", "OIHW", "NCHW"),
    ) + bias.reshape(1, embed_dim, 1, 1)
    ref = ref.reshape(batch, embed_dim, num_patches).transpose(0, 2, 1)
    # bf16 operands -> slightly loose tolerance vs the f32 conv reference.
    assert jnp.allclose(out, ref, atol=2e-2, rtol=2e-2), float(jnp.max(jnp.abs(out - ref)))

    # Module-default tiny config (in_channels=1 -> K=16) routes to the XLA-dot
    # fallback (MXU-starved regime) and matches tightly in f32.
    x2 = jax.random.normal(kx, (2, 1, img_size, img_size), jnp.float32)
    w2 = 0.02 * jax.random.normal(kw, (embed_dim, 1, patch_size, patch_size), jnp.float32)
    out2 = patch_embedding_forward(x2, w2, bias, patch_size=patch_size)
    out2 = jax.block_until_ready(out2)
    ref2 = jax.lax.conv_general_dilated(
        x2, w2, window_strides=(patch_size, patch_size), padding="VALID",
        dimension_numbers=("NCHW", "OIHW", "NCHW"),
    ) + bias.reshape(1, embed_dim, 1, 1)
    ref2 = ref2.reshape(2, embed_dim, num_patches).transpose(0, 2, 1)
    assert jnp.allclose(out2, ref2, atol=1e-4, rtol=1e-4)

    print("KERNEL_OK")
</pallas_src>

<mosaic_0001>
module attributes {stable_mosaic.version = 11 : i64} {
  func.func @_patch_embed_kernel(%arg0: i32, %arg1: memref<128x128xbf16, #tpu.memory_space<vmem>>, %arg2: memref<128x128xbf16, #tpu.memory_space<vmem>>, %arg3: memref<1x128xf32, #tpu.memory_space<vmem>>, %arg4: memref<128x128xf32, #tpu.memory_space<vmem>>) attributes {dimension_semantics = [#tpu.dimension_semantics<parallel>], iteration_bounds = array<i64: 8>, scalar_prefetch = 0 : i64, scratch_operands = 0 : i64, tpu.core_type = #tpu.core_type<tc>, window_params = [{transform_indices = @transform_0, window_bounds = array<i64: 128, 128>}, {pipeline_mode = #tpu.pipeline_mode<synchronous>, transform_indices = @transform_1, window_bounds = array<i64: 128, 128>}, {pipeline_mode = #tpu.pipeline_mode<synchronous>, transform_indices = @transform_2, window_bounds = array<i64: 1, 128>}, {transform_indices = @transform_3, window_bounds = array<i64: 128, 128>}]} {
    %c0 = arith.constant 0 : index
    %c0_0 = arith.constant 0 : index
    %0 = vector.load %arg1[%c0, %c0_0] : memref<128x128xbf16, #tpu.memory_space<vmem>>, vector<128x128xbf16>
    %c0_1 = arith.constant 0 : index
    %c0_2 = arith.constant 0 : index
    %1 = vector.load %arg2[%c0_1, %c0_2] : memref<128x128xbf16, #tpu.memory_space<vmem>>, vector<128x128xbf16>
    %cst = arith.constant dense<0.000000e+00> : vector<128x128xf32>
    %2 = tpu.matmul %0, %1, %cst {dimension_numbers = #tpu.dot_dimension_numbers<[1], [0], [0], [1], [0, 0, 1, 1], [], []>} : vector<128x128xbf16>, vector<128x128xbf16>, vector<128x128xf32> -> vector<128x128xf32>
    %c0_3 = arith.constant 0 : index
    %c0_4 = arith.constant 0 : index
    %3 = vector.load %arg3[%c0_3, %c0_4] : memref<1x128xf32, #tpu.memory_space<vmem>>, vector<1x128xf32>
    %4 = vector.broadcast %3 : vector<1x128xf32> to vector<128x128xf32>
    %5 = arith.addf %2, %4 : vector<128x128xf32>
    %c0_5 = arith.constant 0 : index
    %c0_6 = arith.constant 0 : index
    %6 = vector.load %arg4[%c0_5, %c0_6] : memref<128x128xf32, #tpu.memory_space<vmem>>, vector<128x128xf32>
    tpu.vector_store %arg4[%c0_5, %c0_6], %5 {strides = array<i32>} : memref<128x128xf32, #tpu.memory_space<vmem>>, vector<128x128xf32>,
    return
  }
  func.func @transform_0(%arg0: i32) -> (i32, i32) {
    %c0_i32 = arith.constant 0 : i32
    %c0_i32_0 = arith.constant 0 : i32
    return %arg0, %c0_i32 : i32, i32
  }
  func.func @transform_1(%arg0: i32) -> (i32, i32) {
    %c0_i32 = arith.constant 0 : i32
    %c0_i32_0 = arith.constant 0 : i32
    %c0_i32_1 = arith.constant 0 : i32
    return %c0_i32, %c0_i32_0 : i32, i32
  }
  func.func @transform_2(%arg0: i32) -> (i32, i32) {
    %c0_i32 = arith.constant 0 : i32
    %c0_i32_0 = arith.constant 0 : i32
    %c0_i32_1 = arith.constant 0 : i32
    return %c0_i32, %c0_i32_0 : i32, i32
  }
  func.func @transform_3(%arg0: i32) -> (i32, i32) {
    %c0_i32 = arith.constant 0 : i32
    %c0_i32_0 = arith.constant 0 : i32
    return %arg0, %c0_i32 : i32, i32
  }
}

</mosaic_0001>

<bundles_post_ra>
// kernel: patch_embedding_forward.1
= control target key start
LH: loop header
LB: loop body
LE: loop exit
PB: predicated region body
PF: predicated region fallthrough
CT: control target
= control target key end

     0   :  { %8 = vsyncpa [#allocation3], 0  ;;  %s826_s0 = inlined_call_operand.vmem [shape: bf16[1024,128], index: 0, kind: input, shape index: {}]   ;;  %s827_s1 = inlined_call_operand.vmem [shape: bf16[128,128], index: 1, kind: input, shape index: {}]   ;;  %s828_s2 = inlined_call_operand.vmem [shape: f32[1,128], index: 2, kind: input, shape index: {}]   ;;  %s829_s3 = inlined_call_operand.hbm [shape: f32[1024,128], index: 3, kind: output, shape index: {}]  }
   0x1   :  { %10 = vsyncpa [#allocation3 + $0x1], 0  ;;  %s692_s12 = smov 0   ;;  %s694_s13 = smov 0  }
   0x2   :  { %s696_s14 = smov 0   ;;  %s698_s15 = smov 0  }
   0x3 LB: > { %s713_s16 = sadd.s32 4294967295, %s668_s15   ;;  %s447_s17 = sadd.s32 4294967294, %s668_s15   ;;  %s668_s15 = sphi %s698_s15, %s835_s15   ;;  %s664_s14 = sphi %s696_s14, %s834_s14   ;;  %s660_s13 = sphi %s694_s13, %s833_s13   ;;  %s656_s12 = sphi %s692_s12, %s832_s12  }
   0x4   : > { %s717_s18 = sadd.s32 1, %s668_s15   ;;  %s91_s19 = sadd.s32 1, %s664_s14 }
   0x5   : > { %s88_s20 = ssub.s32 %s668_s15, %s717_s18  ;;  %p101_p0 = scmp.ne.s32.totalorder %s664_s14, %s660_s13 }
   0x6   : > { %p89_p1 = scmp.eq.s32.totalorder %s88_s20, 0  ;;  %p102_p2 = scmp.eq.s32.totalorder %s713_s16, 7 }
   0x7   : > { %p107_p3 = scmp.ne.s32.totalorder %s660_s13, %s656_s12  ;;  %p108_p4 = scmp.eq.s32.totalorder %s447_s17, 7 }
   0x8   : > { %s728_s21 = scalar_select %p89_p1, %s664_s14, %s91_s19  }
   0x9   : > { %p730_p5 = por %p102_p2, %p101_p0  ;;  %p734_p6 = por %p108_p4, %p107_p3 }
   0xa   : > { %p450_p7 = scmp.ge.s32.totalorder %s668_s15, 1  ;;  %p141_p8 = scmp.lt.s32.totalorder %s668_s15, 9 }
   0xc   : > { %p142_p9 = pnand %p450_p7, %p141_p8 }
   0xd   : > { %s452_s5 = sshll.u32 (!%p142_p9), %s713_s16, 4  ;;  %s162_s27 = sand.u32 (!%p142_p9), 1, %s660_s13  }
   0xe   : > { %145 = sbr.rel (%p142_p9) target bundleno = 215 (0xd7), region = 32  ;;  %p166_p10 = scmp.lt.s32.totalorder (!%p142_p9), %s452_s5, 127 }
   0xf   : > { %s451_s28 = sshll.u32 (!%p142_p9), %s162_s27, 7  ;;  %s370_s10 = scalar_lea.sflag (!%p142_p9), [#allocation3], %s162_s27 }
  0x10   : > { %s774_s4 = scalar_lea.vmem (!%p142_p9), [#allocation2], %s451_s28  ;;  %s626_s24 = scalar_lea.hbm (!%p142_p9), %s829_s3, 1024 }
  0x11   : > { %s382_s9 = sshll.u32 (!%p142_p9), %s774_s4, 4  ;;  %s383_s9 = int_to_ptr.vmem [resolvable:$true] %s382_s9 }
  0x13   : > { %v538_v0 = vld [vmem:[%s827_s1 + $0x38] sm:$0xff]  ;;  %v537_v1 = vld [vmem:[%s827_s1 + $0x30] sm:$0xff]  ;;  %v536_v2 = vld [vmem:[%s827_s1 + $0x28] sm:$0xff]  ;;  %s837_s5 = smov (!%p166_p10, %s452_s5), 127 }
  0x14   : > { %304 = vmatpush.bf16.msra.mxu0 %v538_v0  ;;  %540 = vmatpush.bf16.msra.mxu1 %v538_v0  ;;  %v535_v3 = vld [vmem:[%s827_s1 + $0x20] sm:$0xff]  ;;  %v534_v4 = vld [vmem:[%s827_s1 + $0x18] sm:$0xff]  ;;  %v533_v5 = vld [vmem:[%s827_s1 + $0x10] sm:$0xff]  ;;  %s453_s17 = sshll.u32 %s837_s5, 2  ;;  %s539_s5 = sshll.u32 %s713_s16, 7 }
  0x15   : > { %541 = vmatpush.bf16.msra.mxu2 %v538_v0  ;;  %542 = vmatpush.bf16.msra.mxu3 %v538_v0  ;;  %v532_v6 = vld [vmem:[%s827_s1 + $0x8] sm:$0xff]  ;;  %v531_v7 = vld [vmem:[%s827_s1] sm:$0xff]  ;;  %s169_s26 = scalar_lea.vmem %s826_s0, %s453_s17  ;;  %s381_s8 = scalar_lea.hbm %s829_s3, %s539_s5 }
  0x16   : > { %v523_v8 = vld [vmem:[%s169_s26] sm:$0xff]  ;;  %v525_v9 = vld [vmem:[%s169_s26 + $0x10] sm:$0xff]  ;;  %v524_v12 = vld [vmem:[%s169_s26 + $0x8] sm:$0xff]  ;;  %s384_s16 = sshll.u32 %s381_s8, 4  ;;  %s385_s16 = int_to_ptr.hbm [resolvable:$true] %s384_s16 }
  0x17   : > { %v527_v10 = vld [vmem:[%s169_s26 + $0x20] sm:$0xff]  ;;  %v529_v11 = vld [vmem:[%s169_s26 + $0x30] sm:$0xff]  ;;  %v526_v13 = vld [vmem:[%s169_s26 + $0x18] sm:$0xff]  ;;  %s620_s11 = sshra.s32 %s385_s16, 4  ;;  %s621_s11 = int_to_ptr.hbm [resolvable:$true] %s620_s11 }
  0x18   : > { %305 = vmatpush.bf16.msra.mxu0 %v537_v1  ;;  %543 = vmatpush.bf16.msra.mxu1 %v537_v1  ;;  %v528_v14 = vld [vmem:[%s169_s26 + $0x28] sm:$0xff]  ;;  %v530_v15 = vld [vmem:[%s169_s26 + $0x38] sm:$0xff]  ;;  %v605_v16 = vld [vmem:[%s828_s2] ss:$0 sm:$0xff]  ;;  %s622_s17 = scalar_lea.hbm %s621_s11, 128  ;;  %p627_p0 = scmp.lt.s32.totalorder %s621_s11, %s829_s3 }
  0x19   : > { %544 = vmatpush.bf16.msra.mxu2 %v537_v1  ;;  %545 = vmatpush.bf16.msra.mxu3 %v537_v1  ;;  %p623_p11 = scmp.ne.s32.totalorder %s621_s11, %s622_s17  ;;  %p628_p1 = scmp.lt.s32.totalorder %s626_s24, %s622_s17 }
  0x1b   : > { %p624_p12 = pnand %p623_p11, %p730_p5  ;;  %p629_p2 = por %p628_p1, %p627_p0 }
  0x1c   : > { %306 = vmatpush.bf16.msra.mxu0 %v536_v2  ;;  %546 = vmatpush.bf16.msra.mxu1 %v536_v2 }
  0x1d   : > { %547 = vmatpush.bf16.msra.mxu2 %v536_v2  ;;  %548 = vmatpush.bf16.msra.mxu3 %v536_v2  ;;  %p625_p13 = pneg %p624_p12 }
  0x1f   : > { %p630_p3 = pnand %p629_p2, %p625_p13 }
  0x20   : > { %307 = vmatpush.bf16.msra.mxu0 %v535_v3  ;;  %549 = vmatpush.bf16.msra.mxu1 %v535_v3 }
  0x21   : > { %550 = vmatpush.bf16.msra.mxu2 %v535_v3  ;;  %551 = vmatpush.bf16.msra.mxu3 %v535_v3 }
  0x24   : > { %308 = vmatpush.bf16.msra.mxu0 %v534_v4  ;;  %552 = vmatpush.bf16.msra.mxu1 %v534_v4 }
  0x25   : > { %553 = vmatpush.bf16.msra.mxu2 %v534_v4  ;;  %554 = vmatpush.bf16.msra.mxu3 %v534_v4 }
  0x28   : > { %309 = vmatpush.bf16.msra.mxu0 %v533_v5  ;;  %555 = vmatpush.bf16.msra.mxu1 %v533_v5 }
  0x29   : > { %556 = vmatpush.bf16.msra.mxu2 %v533_v5  ;;  %557 = vmatpush.bf16.msra.mxu3 %v533_v5 }
  0x2c   : > { %310 = vmatpush.bf16.msra.mxu0 %v532_v6  ;;  %558 = vmatpush.bf16.msra.mxu1 %v532_v6 }
  0x2d   : > { %559 = vmatpush.bf16.msra.mxu2 %v532_v6  ;;  %560 = vmatpush.bf16.msra.mxu3 %v532_v6 }
  0x30   : > { %311 = vmatpush.bf16.msra.mxu0 %v531_v7  ;;  %561 = vmatpush.bf16.msra.mxu1 %v531_v7 }
  0x31   : > { %562 = vmatpush.bf16.msra.mxu2 %v531_v7  ;;  %563 = vmatpush.bf16.msra.mxu3 %v531_v7 }
  0x33   : > { %312 = vmatmul.bf16.vlgmr.msra.gmra.mxu0 %v523_v8  ;;  %322 = vmatmul.bf16.vlgmr.msra.gmra.mxu1 %v525_v9 }
  0x34   : > { %332 = vmatmul.bf16.vlgmr.msra.gmra.mxu2 %v527_v10  ;;  %342 = vmatmul.bf16.vlgmr.msra.gmra.mxu3 %v529_v11 }
  0x43   : > { %317 = vmatmul.bf16.gmra.mxu0 %v524_v12  ;;  %327 = vmatmul.bf16.gmra.mxu1 %v526_v13 }
  0x44   : > { %337 = vmatmul.bf16.gmra.mxu2 %v528_v14  ;;  %347 = vmatmul.bf16.gmra.mxu3 %v530_v15 }
  0xb0   : > { %v313_v17 = vpop.f32.mrf.mxu0  ;;  %v323_v18 = vpop.f32.mrf.mxu1 }
  0xb1   : > { %v314_v19 = vadd.f32 %v605_v16, %v313_v17  ;;  %v324_v20 = vadd.f32 %v605_v16, %v323_v18 }
  0xb3   : > { %353 = vst [vmem:[%s774_s4] sm:$0xff] %v314_v19 }
  0xb4   : > { %357 = vst [vmem:[%s774_s4 + $0x20] sm:$0xff] %v324_v20 }
  0xb7   : > { %v333_v21 = vpop.f32.mrf.mxu2  ;;  %v343_v22 = vpop.f32.mrf.mxu3 }
  0xb8   : > { %v334_v23 = vadd.f32 %v605_v16, %v333_v21  ;;  %v344_v24 = vadd.f32 %v605_v16, %v343_v22  ;;  %v315_v25 = vpop.f32.mrf.mxu0  ;;  %v325_v26 = vpop.f32.mrf.mxu1 }
  0xb9   : > { %v316_v27 = vadd.f32 %v605_v16, %v315_v25  ;;  %v326_v28 = vadd.f32 %v605_v16, %v325_v26 }
  0xba   : > { %361 = vst [vmem:[%s774_s4 + $0x40] sm:$0xff] %v334_v23 }
  0xbb   : > { %365 = vst [vmem:[%s774_s4 + $0x60] sm:$0xff] %v344_v24 }
  0xbc   : > { %354 = vst [vmem:[%s774_s4 + $0x8] sm:$0xff] %v316_v27 }
  0xbd   : > { %358 = vst [vmem:[%s774_s4 + $0x28] sm:$0xff] %v326_v28 }
  0xbf   : > { %v335_v29 = vpop.f32.mrf.mxu2  ;;  %v345_v30 = vpop.f32.mrf.mxu3 }
  0xc0   : > { %v336_v31 = vadd.f32 %v605_v16, %v335_v29  ;;  %v346_v32 = vadd.f32 %v605_v16, %v345_v30  ;;  %v318_v33 = vpop.f32.mrf.mxu0  ;;  %v328_v34 = vpop.f32.mrf.mxu1 }
  0xc1   : > { %v319_v35 = vadd.f32 %v605_v16, %v318_v33  ;;  %v329_v36 = vadd.f32 %v605_v16, %v328_v34 }
  0xc2   : > { %362 = vst [vmem:[%s774_s4 + $0x48] sm:$0xff] %v336_v31 }
  0xc3   : > { %366 = vst [vmem:[%s774_s4 + $0x68] sm:$0xff] %v346_v32 }
  0xc4   : > { %355 = vst [vmem:[%s774_s4 + $0x10] sm:$0xff] %v319_v35 }
  0xc5   : > { %359 = vst [vmem:[%s774_s4 + $0x30] sm:$0xff] %v329_v36 }
  0xc7   : > { %v338_v37 = vpop.f32.mrf.mxu2  ;;  %v348_v38 = vpop.f32.mrf.mxu3 }
  0xc8   : > { %v339_v39 = vadd.f32 %v605_v16, %v338_v37  ;;  %v349_v40 = vadd.f32 %v605_v16, %v348_v38  ;;  %v320_v41 = vpop.f32.mrf.mxu0  ;;  %v330_v42 = vpop.f32.mrf.mxu1 }
  0xc9   : > { %v321_v43 = vadd.f32 %v605_v16, %v320_v41  ;;  %v331_v44 = vadd.f32 %v605_v16, %v330_v42 }
  0xca   : > { %363 = vst [vmem:[%s774_s4 + $0x50] sm:$0xff] %v339_v39 }
  0xcb   : > { %367 = vst [vmem:[%s774_s4 + $0x70] sm:$0xff] %v349_v40 }
  0xcc   : > { %356 = vst [vmem:[%s774_s4 + $0x18] sm:$0xff] %v321_v43 }
  0xcd   : > { %360 = vst [vmem:[%s774_s4 + $0x38] sm:$0xff] %v331_v44 }
  0xcf   : > { %v340_v45 = vpop.f32.mrf.mxu2  ;;  %v350_v46 = vpop.f32.mrf.mxu3 }
  0xd0   : > { %v341_v47 = vadd.f32 %v605_v16, %v340_v45  ;;  %v351_v48 = vadd.f32 %v605_v16, %v350_v46 }
  0xd2   : > { %364 = vst [vmem:[%s774_s4 + $0x58] sm:$0xff] %v341_v47 }
  0xd3   : > { %368 = vst [vmem:[%s774_s4 + $0x78] sm:$0xff] %v351_v48 }
  0xd4   : > { %633 = shalt.err (!%p630_p3)
}
  0xd5   : > { %s670_s27 = smov 128   ;;  %s671_s28 = smov 8  }
  0xd6   : > { %564 = dma.vmem_to_hbm [thread:$0]  (%p730_p5), %s383_s9, 2048, %s385_s16, %s370_s10, %s670_s27, %s670_s27, %s671_s28  }
  0xd7 PF: > { %p570_p4 = scmp.ge.s32.totalorder %s668_s15, 2  ;;  %s399_s29 = sand.u32 1, %s656_s12  }
  0xd8   : > { %s400_s30 = scalar_lea.sflag [#allocation3], %s399_s29 }
  0xd9   : > { %p567_p7 = pnand %p570_p4, %p734_p6 }
  0xdb   : > { %p568_p8 = pneg %p567_p7 }
  0xdd   : > { %651 = dma.done.wait (%p568_p8), %s400_s30, 2048  }
  0xde   : > { %653 = vsyncadd (%p568_p8), %s400_s30, 4294965248  ;;  %p13_p9 = scmp.ge.s32.totalorder %s717_s18, 10   ;;  %s832_s12 = smov %s660_s13 }
  0xdf   : > { %s833_s13 = smov %s664_s14  ;;  %s834_s14 = smov %s728_s21 }
  0xe0   : > { %s835_s15 = smov %s717_s18  ;;  %15 = sbr.rel (!%p13_p9) target bundleno = 3 (0x3), region = 67 }
  0xe5   :  { %406 = vsyncpa [#allocation3], 1 }
  0xe6   :  { %408 = vsyncpa [#allocation3 + $0x1], 1 }

</bundles_post_ra>
